<compile_context>
chip_gen: v6e
topology: v6e:2x2x1
jax: 0.10.0
libtpu: 0.0.40
codegen_flags: <defaults>
</compile_context>

<pallas_src>
import jax
import jax.numpy as jnp
from jax.experimental import pallas as pl
from jax.experimental.pallas import tpu as pltpu

IN_DIM = 100   # fc1 input features (fixed by the module)
HID_DIM = 200  # fc1/fc2 output features (fixed by the module)
LANE = 128


def _round_up(n, m):
    return ((n + m - 1) // m) * m


IN_PAD = _round_up(IN_DIM, LANE)    # 128
HID_PAD = _round_up(HID_DIM, LANE)  # 256


def generator_kernel(x_ref, w1_ref, b1_ref, w2_ref, b2_ref, w3_ref, b3_ref,
                     o_ref):
    """relu(fc1) -> relu(fc2) -> fc3 -> tanh -> (x+1)/2 on one batch tile."""
    # Layer 1: bf16 matmul, f32 accumulate / epilogue.
    h = jnp.dot(x_ref[...], w1_ref[...], preferred_element_type=jnp.float32)
    h = jnp.maximum(h + b1_ref[...], 0.0)
    # Layer 2.
    h = jnp.dot(h.astype(w2_ref.dtype), w2_ref[...],
                preferred_element_type=jnp.float32)
    h = jnp.maximum(h + b2_ref[...], 0.0)
    # Layer 3 + Tanh + affine output squash.
    h = jnp.dot(h.astype(w3_ref.dtype), w3_ref[...],
                preferred_element_type=jnp.float32)
    h = jnp.tanh(h + b3_ref[...])
    o_ref[...] = ((h + 1.0) * 0.5).astype(o_ref.dtype)


def prepare_params(params, dim):
    """One-time prep: transpose PyTorch (out,in) weights to (in,out), zero-pad
    all feature dims to multiples of 128, cast weights to bf16 for the MXU."""
    out_pad = _round_up(dim, LANE)

    def prep_w(w, in_pad, out_p):
        wt = jnp.asarray(w, jnp.float32).T                      # (in, out)
        wp = jnp.zeros((in_pad, out_p), jnp.float32)
        wp = wp.at[: wt.shape[0], : wt.shape[1]].set(wt)
        return wp.astype(jnp.bfloat16)

    def prep_b(b, out_p):
        b = jnp.asarray(b, jnp.float32)
        return jnp.zeros((1, out_p), jnp.float32).at[0, : b.shape[0]].set(b)

    return dict(
        w1=prep_w(params["w1"], IN_PAD, HID_PAD), b1=prep_b(params["b1"], HID_PAD),
        w2=prep_w(params["w2"], HID_PAD, HID_PAD), b2=prep_b(params["b2"], HID_PAD),
        w3=prep_w(params["w3"], HID_PAD, out_pad), b3=prep_b(params["b3"], out_pad),
        dim=dim, out_pad=out_pad,
    )


def generator_forward(x, prepped):
    """x: (B, 100) float32. prepped: output of prepare_params()."""
    B = x.shape[0]
    dim, out_pad = prepped["dim"], prepped["out_pad"]

    # Batch tile: full batch (rounded to sublane multiple) when small, else
    # 256-row tiles pipelined over a grid.
    tm = min(256, _round_up(B, 8))
    bp = _round_up(B, tm)
    grid = (bp // tm,)

    # Pad the activations once per call (zeros contract against zero weight
    # rows, so padding is exact).
    xp = jnp.zeros((bp, IN_PAD), jnp.bfloat16)
    xp = xp.at[:B, :IN_DIM].set(x.astype(jnp.bfloat16))

    w1, b1 = prepped["w1"], prepped["b1"]
    w2, b2 = prepped["w2"], prepped["b2"]
    w3, b3 = prepped["w3"], prepped["b3"]

    # Weights/biases: same block for every grid step -> VMEM-resident.
    resident = lambda a: pl.BlockSpec(a.shape, lambda i: (0, 0))

    flops = 2 * bp * (IN_PAD * HID_PAD + HID_PAD * HID_PAD + HID_PAD * out_pad)
    bytes_accessed = (
        xp.size * 2 + (w1.size + w2.size + w3.size) * 2
        + (b1.size + b2.size + b3.size) * 4 + bp * out_pad * 4)

    out = pl.pallas_call(
        generator_kernel,
        out_shape=jax.ShapeDtypeStruct((bp, out_pad), jnp.float32),
        grid_spec=pltpu.PrefetchScalarGridSpec(
            num_scalar_prefetch=0,
            grid=grid,
            in_specs=[
                pl.BlockSpec((tm, IN_PAD), lambda i: (i, 0)),
                resident(w1), resident(b1),
                resident(w2), resident(b2),
                resident(w3), resident(b3),
            ],
            out_specs=pl.BlockSpec((tm, out_pad), lambda i: (i, 0)),
        ),
        compiler_params=pltpu.CompilerParams(
            dimension_semantics=("parallel",),
            vmem_limit_bytes=32 * 1024 * 1024,
        ),
        cost_estimate=pl.CostEstimate(
            flops=flops,
            transcendentals=bp * out_pad,
            bytes_accessed=bytes_accessed,
        ),
    )(xp, w1, b1, w2, b2, w3, b3)

    return out[:B, :dim]


def init_params(key, dim):
    """Deterministic init mimicking nn.Linear's uniform(-1/sqrt(fan_in)) scheme,
    stored in PyTorch (out, in) layout."""
    ks = jax.random.split(key, 6)

    def linear_init(kw, kb, fan_in, fan_out):
        bound = 1.0 / jnp.sqrt(fan_in)
        w = jax.random.uniform(kw, (fan_out, fan_in), jnp.float32, -bound, bound)
        b = jax.random.uniform(kb, (fan_out,), jnp.float32, -bound, bound)
        return w, b

    w1, b1 = linear_init(ks[0], ks[1], IN_DIM, HID_DIM)
    w2, b2 = linear_init(ks[2], ks[3], HID_DIM, HID_DIM)
    w3, b3 = linear_init(ks[4], ks[5], HID_DIM, dim)
    return dict(w1=w1, b1=b1, w2=w2, b2=b2, w3=w3, b3=b3)


def generator_reference(x, params):
    """Pure-JAX f32 reference matching the PyTorch module."""
    h = jnp.maximum(x @ params["w1"].T + params["b1"], 0.0)
    h = jnp.maximum(h @ params["w2"].T + params["b2"], 0.0)
    h = jnp.tanh(h @ params["w3"].T + params["b3"])
    return (h + 1.0) / 2.0


if __name__ == "__main__":
    key = jax.random.PRNGKey(0)
    k_x, k_p = jax.random.split(key)

    batch, dim = 8, 64
    x = jax.random.normal(k_x, (batch, IN_DIM), jnp.float32)
    params = init_params(k_p, dim)
    prepped = prepare_params(params, dim)

    out = jax.block_until_ready(generator_forward(x, prepped))
    ref = generator_reference(x, params)

    assert out.shape == (batch, dim)
    # bf16 matmul inputs -> tolerance loosened vs the pure-f32 reference.
    assert jnp.max(jnp.abs(out - ref)) < 2e-2
    print("KERNEL_OK")
</pallas_src>

<mosaic_0001>
module attributes {stable_mosaic.version = 11 : i64} {
  func.func @generator_kernel(%arg0: i32, %arg1: memref<8x128xbf16, #tpu.memory_space<vmem>>, %arg2: memref<128x256xbf16, #tpu.memory_space<vmem>>, %arg3: memref<1x256xf32, #tpu.memory_space<vmem>>, %arg4: memref<256x256xbf16, #tpu.memory_space<vmem>>, %arg5: memref<1x256xf32, #tpu.memory_space<vmem>>, %arg6: memref<256x128xbf16, #tpu.memory_space<vmem>>, %arg7: memref<1x128xf32, #tpu.memory_space<vmem>>, %arg8: memref<8x128xf32, #tpu.memory_space<vmem>>) attributes {dimension_semantics = [#tpu.dimension_semantics<parallel>], iteration_bounds = array<i64: 1>, scalar_prefetch = 0 : i64, scratch_operands = 0 : i64, tpu.core_type = #tpu.core_type<tc>, window_params = [{transform_indices = @transform_0, window_bounds = array<i64: 8, 128>}, {pipeline_mode = #tpu.pipeline_mode<synchronous>, transform_indices = @transform_1, window_bounds = array<i64: 128, 256>}, {pipeline_mode = #tpu.pipeline_mode<synchronous>, transform_indices = @transform_2, window_bounds = array<i64: 1, 256>}, {pipeline_mode = #tpu.pipeline_mode<synchronous>, transform_indices = @transform_3, window_bounds = array<i64: 256, 256>}, {pipeline_mode = #tpu.pipeline_mode<synchronous>, transform_indices = @transform_4, window_bounds = array<i64: 1, 256>}, {pipeline_mode = #tpu.pipeline_mode<synchronous>, transform_indices = @transform_5, window_bounds = array<i64: 256, 128>}, {pipeline_mode = #tpu.pipeline_mode<synchronous>, transform_indices = @transform_6, window_bounds = array<i64: 1, 128>}, {transform_indices = @transform_7, window_bounds = array<i64: 8, 128>}]} {
    %c0 = arith.constant 0 : index
    %c0_0 = arith.constant 0 : index
    %0 = vector.load %arg1[%c0, %c0_0] : memref<8x128xbf16, #tpu.memory_space<vmem>>, vector<8x128xbf16>
    %c0_1 = arith.constant 0 : index
    %c0_2 = arith.constant 0 : index
    %1 = vector.load %arg2[%c0_1, %c0_2] : memref<128x256xbf16, #tpu.memory_space<vmem>>, vector<128x256xbf16>
    %cst = arith.constant dense<0.000000e+00> : vector<8x256xf32>
    %2 = tpu.matmul %0, %1, %cst {dimension_numbers = #tpu.dot_dimension_numbers<[1], [0], [0], [1], [0, 0, 1, 1], [], []>} : vector<8x128xbf16>, vector<128x256xbf16>, vector<8x256xf32> -> vector<8x256xf32>
    %c0_3 = arith.constant 0 : index
    %c0_4 = arith.constant 0 : index
    %3 = vector.load %arg3[%c0_3, %c0_4] : memref<1x256xf32, #tpu.memory_space<vmem>>, vector<1x256xf32>
    %4 = vector.broadcast %3 : vector<1x256xf32> to vector<8x256xf32>
    %5 = arith.addf %2, %4 : vector<8x256xf32>
    %cst_5 = arith.constant 0.000000e+00 : f32
    %6 = vector.broadcast %cst_5 : f32 to vector<8x256xf32>
    %7 = arith.maximumf %5, %6 : vector<8x256xf32>
    %8 = arith.truncf %7 : vector<8x256xf32> to vector<8x256xbf16>
    %c0_6 = arith.constant 0 : index
    %c0_7 = arith.constant 0 : index
    %9 = vector.load %arg4[%c0_6, %c0_7] : memref<256x256xbf16, #tpu.memory_space<vmem>>, vector<256x256xbf16>
    %cst_8 = arith.constant dense<0.000000e+00> : vector<8x256xf32>
    %10 = tpu.matmul %8, %9, %cst_8 {dimension_numbers = #tpu.dot_dimension_numbers<[1], [0], [0], [1], [0, 0, 1, 1], [], []>} : vector<8x256xbf16>, vector<256x256xbf16>, vector<8x256xf32> -> vector<8x256xf32>
    %c0_9 = arith.constant 0 : index
    %c0_10 = arith.constant 0 : index
    %11 = vector.load %arg5[%c0_9, %c0_10] : memref<1x256xf32, #tpu.memory_space<vmem>>, vector<1x256xf32>
    %12 = vector.broadcast %11 : vector<1x256xf32> to vector<8x256xf32>
    %13 = arith.addf %10, %12 : vector<8x256xf32>
    %cst_11 = arith.constant 0.000000e+00 : f32
    %14 = vector.broadcast %cst_11 : f32 to vector<8x256xf32>
    %15 = arith.maximumf %13, %14 : vector<8x256xf32>
    %16 = arith.truncf %15 : vector<8x256xf32> to vector<8x256xbf16>
    %c0_12 = arith.constant 0 : index
    %c0_13 = arith.constant 0 : index
    %17 = vector.load %arg6[%c0_12, %c0_13] : memref<256x128xbf16, #tpu.memory_space<vmem>>, vector<256x128xbf16>
    %cst_14 = arith.constant dense<0.000000e+00> : vector<8x128xf32>
    %18 = tpu.matmul %16, %17, %cst_14 {dimension_numbers = #tpu.dot_dimension_numbers<[1], [0], [0], [1], [0, 0, 1, 1], [], []>} : vector<8x256xbf16>, vector<256x128xbf16>, vector<8x128xf32> -> vector<8x128xf32>
    %c0_15 = arith.constant 0 : index
    %c0_16 = arith.constant 0 : index
    %19 = vector.load %arg7[%c0_15, %c0_16] : memref<1x128xf32, #tpu.memory_space<vmem>>, vector<1x128xf32>
    %20 = vector.broadcast %19 : vector<1x128xf32> to vector<8x128xf32>
    %21 = arith.addf %18, %20 : vector<8x128xf32>
    %22 = math.tanh %21 : vector<8x128xf32>
    %cst_17 = arith.constant 1.000000e+00 : f32
    %23 = vector.broadcast %cst_17 : f32 to vector<8x128xf32>
    %24 = arith.addf %22, %23 : vector<8x128xf32>
    %cst_18 = arith.constant 5.000000e-01 : f32
    %25 = vector.broadcast %cst_18 : f32 to vector<8x128xf32>
    %26 = arith.mulf %24, %25 : vector<8x128xf32>
    %c0_19 = arith.constant 0 : index
    %c0_20 = arith.constant 0 : index
    %27 = vector.load %arg8[%c0_19, %c0_20] : memref<8x128xf32, #tpu.memory_space<vmem>>, vector<8x128xf32>
    tpu.vector_store %arg8[%c0_19, %c0_20], %26 {strides = array<i32>} : memref<8x128xf32, #tpu.memory_space<vmem>>, vector<8x128xf32>,
    return
  }
  func.func @transform_0(%arg0: i32) -> (i32, i32) {
    %c0_i32 = arith.constant 0 : i32
    %c0_i32_0 = arith.constant 0 : i32
    return %arg0, %c0_i32 : i32, i32
  }
  func.func @transform_1(%arg0: i32) -> (i32, i32) {
    %c0_i32 = arith.constant 0 : i32
    %c0_i32_0 = arith.constant 0 : i32
    %c0_i32_1 = arith.constant 0 : i32
    return %c0_i32, %c0_i32_0 : i32, i32
  }
  func.func @transform_2(%arg0: i32) -> (i32, i32) {
    %c0_i32 = arith.constant 0 : i32
    %c0_i32_0 = arith.constant 0 : i32
    %c0_i32_1 = arith.constant 0 : i32
    return %c0_i32, %c0_i32_0 : i32, i32
  }
  func.func @transform_3(%arg0: i32) -> (i32, i32) {
    %c0_i32 = arith.constant 0 : i32
    %c0_i32_0 = arith.constant 0 : i32
    %c0_i32_1 = arith.constant 0 : i32
    return %c0_i32, %c0_i32_0 : i32, i32
  }
  func.func @transform_4(%arg0: i32) -> (i32, i32) {
    %c0_i32 = arith.constant 0 : i32
    %c0_i32_0 = arith.constant 0 : i32
    %c0_i32_1 = arith.constant 0 : i32
    return %c0_i32, %c0_i32_0 : i32, i32
  }
  func.func @transform_5(%arg0: i32) -> (i32, i32) {
    %c0_i32 = arith.constant 0 : i32
    %c0_i32_0 = arith.constant 0 : i32
    %c0_i32_1 = arith.constant 0 : i32
    return %c0_i32, %c0_i32_0 : i32, i32
  }
  func.func @transform_6(%arg0: i32) -> (i32, i32) {
    %c0_i32 = arith.constant 0 : i32
    %c0_i32_0 = arith.constant 0 : i32
    %c0_i32_1 = arith.constant 0 : i32
    return %c0_i32, %c0_i32_0 : i32, i32
  }
  func.func @transform_7(%arg0: i32) -> (i32, i32) {
    %c0_i32 = arith.constant 0 : i32
    %c0_i32_0 = arith.constant 0 : i32
    return %arg0, %c0_i32 : i32, i32
  }
}

</mosaic_0001>

<bundles_post_ra>
// kernel: tpu_custom_call.1
= control target key start
LH: loop header
LB: loop body
LE: loop exit
PB: predicated region body
PF: predicated region fallthrough
CT: control target
= control target key end

     0   :  { %12 = vsyncpa [#allocation3], 0  ;;  %s1049_s0 = inlined_call_operand.hbm [shape: bf16[8,128], index: 0, kind: input, shape index: {}]   ;;  %s1050_s1 = inlined_call_operand.hbm [shape: bf16[128,256], index: 1, kind: input, shape index: {}]   ;;  %s1051_s2 = inlined_call_operand.vmem [shape: f32[1,256], index: 2, kind: input, shape index: {}]   ;;  %s1052_s3 = inlined_call_operand.hbm [shape: bf16[256,256], index: 3, kind: input, shape index: {}]   ;;  %s1053_s4 = inlined_call_operand.vmem [shape: f32[1,256], index: 4, kind: input, shape index: {}]   ;;  %s1054_s5 = inlined_call_operand.hbm [shape: bf16[256,128], index: 5, kind: input, shape index: {}]   ;;  %s1055_s6 = inlined_call_operand.vmem [shape: f32[1,128], index: 6, kind: input, shape index: {}]   ;;  %s1056_s7 = inlined_call_operand.hbm [shape: f32[8,128], index: 7, kind: output, shape index: {}]  }
   0x1   :  { %13 = vsyncpa [#allocation6], 0 }
   0x2   :  { %14 = vsyncpa [#allocation9], 0 }
   0x3   :  { %15 = vsyncpa [#allocation4], 0  ;;  %s975_s24 = smov [#allocation5]  }
   0x4   :  { %s31_s25 = sshll.u32 %s975_s24, 4  ;;  %s32_s25 = int_to_ptr.vmem [resolvable:$true] %s31_s25 }
   0x5   :  { %s875_s26 = scalar_lea.vmem %s32_s25, 2048  ;;  %p880_p1 = scmp.lt.s32.totalorder %s32_s25, %s32_s25 }
   0x6   :  { %p876_p0 = scmp.ne.s32.totalorder %s32_s25, %s875_s26  ;;  %p881_p2 = scmp.lt.s32.totalorder %s875_s26, %s875_s26 }
   0x8   :  { %p882_p3 = por %p881_p2, %p880_p1 }
   0xa   :  { %p883_p4 = pnand %p882_p3, %p876_p0 }
   0xc   :  { %886 = shalt.err (!%p883_p4)
}
   0xd   :  { %s976_s27 = smov 128   ;;  %s977_s28 = smov 8  }
   0xe   :  { %37 = dma.hbm_to_vmem [thread:$0]  %s1050_s1, 2048, %s32_s25, [#allocation6], %s976_s27, %s976_s27, %s977_s28  }
   0xf   :  { %s978_s8 = smov [#allocation2]   ;;  %s979_s10 = smov [#allocation7]  }
  0x10   :  { %s22_s9 = sshll.u32 %s978_s8, 4  ;;  %s45_s11 = sshll.u32 %s979_s10, 4  ;;  %s23_s9 = int_to_ptr.vmem [resolvable:$true] %s22_s9  ;;  %s46_s11 = int_to_ptr.vmem [resolvable:$true] %s45_s11 }
  0x11   :  { %s895_s12 = scalar_lea.vmem %s23_s9, 64  ;;  %p900_p6 = scmp.lt.s32.totalorder %s23_s9, %s23_s9 }
  0x12   :  { %p896_p5 = scmp.ne.s32.totalorder %s23_s9, %s895_s12  ;;  %p901_p7 = scmp.lt.s32.totalorder %s895_s12, %s895_s12 }
  0x14   :  { %p902_p8 = por %p901_p7, %p900_p6 }
  0x16   :  { %p903_p9 = pnand %p902_p8, %p896_p5 }
  0x18   :  { %906 = shalt.err (!%p903_p9)
}
  0x19   :  { %25 = dma.hbm_to_vmem [thread:$0]  %s1049_s0, 64, %s23_s9, [#allocation3]  }
  0x1a   :  { %s915_s15 = scalar_lea.vmem %s46_s11, 4096  ;;  %p920_p11 = scmp.lt.s32.totalorder %s46_s11, %s46_s11 }
  0x1b   :  { %p916_p10 = scmp.ne.s32.totalorder %s46_s11, %s915_s15  ;;  %p921_p12 = scmp.lt.s32.totalorder %s915_s15, %s915_s15 }
  0x1d   :  { %p922_p13 = por %p921_p12, %p920_p11 }
  0x1f   :  { %p923_p0 = pnand %p922_p13, %p916_p10 }
  0x21   :  { %926 = shalt.err (!%p923_p0)
}
  0x22   :  { %51 = dma.hbm_to_vmem [thread:$0]  %s1052_s3, 4096, %s46_s11, [#allocation6], %s976_s27, %s976_s27, %s977_s28  }
  0x23   :  { %s980_s17 = smov [#allocation8]  }
  0x24   :  { %s59_s18 = sshll.u32 %s980_s17, 4  ;;  %s60_s18 = int_to_ptr.vmem [resolvable:$true] %s59_s18 }
  0x25   :  { %s935_s19 = scalar_lea.vmem %s60_s18, 2048  ;;  %p940_p2 = scmp.lt.s32.totalorder %s60_s18, %s60_s18 }
  0x26   :  { %p936_p1 = scmp.ne.s32.totalorder %s60_s18, %s935_s19  ;;  %p941_p3 = scmp.lt.s32.totalorder %s935_s19, %s935_s19 }
  0x28   :  { %p942_p4 = por %p941_p3, %p940_p2 }
  0x2a   :  { %p943_p5 = pnand %p942_p4, %p936_p1 }
  0x2c   :  { %946 = shalt.err (!%p943_p5)
}
  0x2d   :  { %s981_s0 = smov 64   ;;  %s982_s20 = smov 4  }
  0x2e   :  { %65 = dma.hbm_to_vmem [thread:$0]  %s1054_s5, 2048, %s60_s18, [#allocation9], %s981_s0, %s981_s0, %s982_s20  }
  0x2f   :  { %967 = dma.done.wait [#allocation3], 64  }
  0x30   :  { %968 = vsyncadd [#allocation3], 4294967232 }
  0x31   :  { %969 = dma.done.wait [#allocation6], 6144  }
  0x32   :  { %970 = vsyncadd [#allocation6], 4294961152 }
  0x33   :  { %971 = dma.done.wait [#allocation9], 2048  }
  0x34   :  { %972 = vsyncadd [#allocation9], 4294965248  ;;  %v983_v0 = vmov 0   ;;  %v777_v1 = vld [vmem:[#allocation5 + $0x74] ss:$8 sps:$4 sm:$0xff]   ;;  %v853_v54 = vld [vmem:[#allocation8 + $0x68] sm:$0xff]   ;;  %v100_v62 = vlaneseq }
  0x35   :  { %222 = vmatprep.mubr.bf16.mxu0 %v983_v0  ;;  %v779_v2 = vld [vmem:[#allocation5 + $0x70] ss:$8 sps:$4 sm:$0xff]   ;;  %190 = vmatprep.subr.bf16.mxu0 %v777_v1  ;;  %v780_v3 = vld [vmem:[#allocation5 + $0x64] ss:$8 sps:$4 sm:$0xff]   ;;  %v782_v4 = vld [vmem:[#allocation5 + $0x60] ss:$8 sps:$4 sm:$0xff]  }
  0x36   :  { %191 = vmatpush1.bf16.msra.mxu0 %v779_v2  ;;  %v783_v5 = vld [vmem:[#allocation5 + $0x54] ss:$8 sps:$4 sm:$0xff]   ;;  %v785_v6 = vld [vmem:[#allocation5 + $0x50] ss:$8 sps:$4 sm:$0xff]   ;;  %v786_v7 = vld [vmem:[#allocation5 + $0x44] ss:$8 sps:$4 sm:$0xff]  }
  0x37   :  { %192 = vmatprep.subr.bf16.mxu0 %v780_v3  ;;  %v788_v8 = vld [vmem:[#allocation5 + $0x40] ss:$8 sps:$4 sm:$0xff]   ;;  %v789_v9 = vld [vmem:[#allocation5 + $0x34] ss:$8 sps:$4 sm:$0xff]   ;;  %v803_v11 = vld [vmem:[#allocation7 + $0x70] ss:$8 sps:$4 sm:$0xff]  }
  0x38   :  { %v801_v10 = vld [vmem:[#allocation7 + $0x74] ss:$8 sps:$4 sm:$0xff]   ;;  %v804_v12 = vld [vmem:[#allocation7 + $0x64] ss:$8 sps:$4 sm:$0xff]   ;;  %v791_v13 = vld [vmem:[#allocation5 + $0x30] ss:$8 sps:$4 sm:$0xff]  }
  0x39   :  { %439 = vmatprep.subr.bf16.mxu1 %v801_v10  ;;  %v806_v14 = vld [vmem:[#allocation7 + $0x60] ss:$8 sps:$4 sm:$0xff]   ;;  %v807_v15 = vld [vmem:[#allocation7 + $0x54] ss:$8 sps:$4 sm:$0xff]   ;;  %v792_v16 = vld [vmem:[#allocation5 + $0x24] ss:$8 sps:$4 sm:$0xff]  }
  0x3a   :  { %193 = vmatpush1.bf16.msra.mxu0 %v782_v4  ;;  %440 = vmatpush1.bf16.msra.mxu1 %v803_v11  ;;  %v794_v17 = vld [vmem:[#allocation5 + $0x20] ss:$8 sps:$4 sm:$0xff]   ;;  %v809_v18 = vld [vmem:[#allocation7 + $0x50] ss:$8 sps:$4 sm:$0xff]   ;;  %v810_v19 = vld [vmem:[#allocation7 + $0x44] ss:$8 sps:$4 sm:$0xff]  }
  0x3b   :  { %194 = vmatprep.subr.bf16.mxu0 %v783_v5  ;;  %441 = vmatprep.subr.bf16.mxu1 %v804_v12  ;;  %v795_v20 = vld [vmem:[#allocation5 + $0x14] ss:$8 sps:$4 sm:$0xff]   ;;  %v797_v21 = vld [vmem:[#allocation5 + $0x10] ss:$8 sps:$4 sm:$0xff]   ;;  %v812_v22 = vld [vmem:[#allocation7 + $0x40] ss:$8 sps:$4 sm:$0xff]  }
  0x3c   :  { %v813_v23 = vld [vmem:[#allocation7 + $0x34] ss:$8 sps:$4 sm:$0xff]   ;;  %v798_v24 = vld [vmem:[#allocation5 + $0x4] ss:$8 sps:$4 sm:$0xff]   ;;  %v800_v25 = vld [vmem:[#allocation5] ss:$8 sps:$4 sm:$0xff]  }
  0x3d   :  { %v815_v26 = vld [vmem:[#allocation7 + $0x30] ss:$8 sps:$4 sm:$0xff]   ;;  %v816_v27 = vld [vmem:[#allocation7 + $0x24] ss:$8 sps:$4 sm:$0xff]   ;;  %v81_v28 = vld [vmem:[#allocation2] sm:$0xf] }
  0x3e   :  { %195 = vmatpush1.bf16.msra.mxu0 %v785_v6  ;;  %442 = vmatpush1.bf16.msra.mxu1 %v806_v14  ;;  %v818_v29 = vld [vmem:[#allocation7 + $0x20] ss:$8 sps:$4 sm:$0xff]   ;;  %v819_v30 = vld [vmem:[#allocation7 + $0x14] ss:$8 sps:$4 sm:$0xff]   ;;  %v821_v31 = vld [vmem:[#allocation7 + $0x10] ss:$8 sps:$4 sm:$0xff]  }
  0x3f   :  { %196 = vmatprep.subr.bf16.mxu0 %v786_v7  ;;  %443 = vmatprep.subr.bf16.mxu1 %v807_v15  ;;  %v822_v32 = vld [vmem:[#allocation7 + $0x4] ss:$8 sps:$4 sm:$0xff]   ;;  %v824_v33 = vld [vmem:[#allocation7] ss:$8 sps:$4 sm:$0xff]   ;;  %v825_v34 = vld [vmem:[#allocation7 + $0xf4] ss:$8 sps:$4 sm:$0xff]  }
  0x40   :  { %v827_v35 = vld [vmem:[#allocation7 + $0xf0] ss:$8 sps:$4 sm:$0xff]   ;;  %v828_v36 = vld [vmem:[#allocation7 + $0xe4] ss:$8 sps:$4 sm:$0xff]   ;;  %v830_v37 = vld [vmem:[#allocation7 + $0xe0] ss:$8 sps:$4 sm:$0xff]  }
  0x41   :  { %v831_v38 = vld [vmem:[#allocation7 + $0xd4] ss:$8 sps:$4 sm:$0xff]   ;;  %v833_v39 = vld [vmem:[#allocation7 + $0xd0] ss:$8 sps:$4 sm:$0xff]   ;;  %v834_v40 = vld [vmem:[#allocation7 + $0xc4] ss:$8 sps:$4 sm:$0xff]  }
  0x42   :  { %197 = vmatpush1.bf16.msra.mxu0 %v788_v8  ;;  %444 = vmatpush1.bf16.msra.mxu1 %v809_v18  ;;  %v836_v41 = vld [vmem:[#allocation7 + $0xc0] ss:$8 sps:$4 sm:$0xff]   ;;  %v837_v42 = vld [vmem:[#allocation7 + $0xb4] ss:$8 sps:$4 sm:$0xff]   ;;  %v839_v43 = vld [vmem:[#allocation7 + $0xb0] ss:$8 sps:$4 sm:$0xff]  }
  0x43   :  { %198 = vmatprep.subr.bf16.mxu0 %v789_v9  ;;  %445 = vmatprep.subr.bf16.mxu1 %v810_v19  ;;  %v840_v44 = vld [vmem:[#allocation7 + $0xa4] ss:$8 sps:$4 sm:$0xff]   ;;  %v842_v45 = vld [vmem:[#allocation7 + $0xa0] ss:$8 sps:$4 sm:$0xff]   ;;  %v843_v46 = vld [vmem:[#allocation7 + $0x94] ss:$8 sps:$4 sm:$0xff]  }
  0x44   :  { %v845_v47 = vld [vmem:[#allocation7 + $0x90] ss:$8 sps:$4 sm:$0xff]   ;;  %v846_v48 = vld [vmem:[#allocation7 + $0x84] ss:$8 sps:$4 sm:$0xff]   ;;  %v848_v49 = vld [vmem:[#allocation7 + $0x80] ss:$8 sps:$4 sm:$0xff]  }
  0x45   :  { %v849_v50 = vld [vmem:[#allocation8 + $0x78] sm:$0xff]   ;;  %v851_v52 = vld [vmem:[#allocation8 + $0x70] sm:$0xff]   ;;  %v854_v55 = vld [vmem:[#allocation8 + $0x28] sm:$0xff]   ;;  %v101_v63 = vshrl.u32 %v100_v62, 7 }
  0x46   :  { %199 = vmatpush1.bf16.msra.mxu0 %v791_v13  ;;  %446 = vmatpush1.bf16.msra.mxu1 %v812_v22  ;;  %v850_v51 = vld [vmem:[#allocation8 + $0x38] sm:$0xff]   ;;  %v852_v53 = vld [vmem:[#allocation8 + $0x30] sm:$0xff]   ;;  %v855_v56 = vld [vmem:[#allocation8 + $0x60] sm:$0xff]  }
  0x47   :  { %200 = vmatprep.subr.bf16.mxu0 %v792_v16  ;;  %447 = vmatprep.subr.bf16.mxu1 %v813_v23  ;;  %v856_v57 = vld [vmem:[#allocation8 + $0x20] sm:$0xff]   ;;  %v857_v58 = vld [vmem:[#allocation8 + $0x58] sm:$0xff]   ;;  %v859_v60 = vld [vmem:[#allocation8 + $0x50] sm:$0xff]   ;;  %v102_v0 = vsub.s32 0, %v101_v63  ;;  %v106_v2 = vsub.s32 1, %v101_v63 }
  0x48   :  { %v858_v59 = vld [vmem:[#allocation8 + $0x18] sm:$0xff]   ;;  %v860_v61 = vld [vmem:[#allocation8 + $0x10] sm:$0xff]   ;;  %v861_v15 = vld [vmem:[#allocation8 + $0x48] sm:$0xff]  }
  0x49   :  { %v98_v1 = vld [vmem:[%s1051_s2] sm:$0x3]  ;;  %v862_v16 = vld [vmem:[#allocation8 + $0x8] sm:$0xff]   ;;  %v864_v18 = vld [vmem:[#allocation8] sm:$0xff]  }
  0x4a   :  { %201 = vmatpush1.bf16.msra.mxu0 %v794_v17  ;;  %448 = vmatpush1.bf16.msra.mxu1 %v815_v26  ;;  %v103_v3 = vrot.slane %v98_v1, %v102_v0  ;;  %v107_v4 = vrot.slane %v98_v1, %v106_v2  ;;  %v863_v17 = vld [vmem:[#allocation8 + $0x40] sm:$0xff]   ;;  %v267_v19 = vld [vmem:[%s1053_s4] sm:$0x3]  ;;  %s984_s4 = smov [#allocation10]  }
  0x4b   :  { %202 = vmatprep.subr.bf16.mxu0 %v795_v20  ;;  %449 = vmatprep.subr.bf16.mxu1 %v816_v27  ;;  %v272_v20 = vrot.slane %v267_v19, %v102_v0  ;;  %s669_s26 = sshll.u32 %s984_s4, 4  ;;  %s670_s26 = int_to_ptr.vmem [resolvable:$true] %s669_s26 }
  0x4c   :  { %s947_s27 = scalar_lea.vmem %s670_s26, 128  ;;  %p952_p7 = scmp.lt.s32.totalorder %s670_s26, %s670_s26 }
  0x4d   :  { %p948_p6 = scmp.ne.s32.totalorder %s670_s26, %s947_s27  ;;  %p953_p8 = scmp.lt.s32.totalorder %s947_s27, %s947_s27 }
  0x4e   :  { %203 = vmatpush1.bf16.msra.mxu0 %v797_v21  ;;  %450 = vmatpush1.bf16.msra.mxu1 %v818_v29  ;;  %v276_v21 = vrot.slane %v267_v19, %v106_v2 }
  0x4f   :  { %204 = vmatprep.subr.bf16.mxu0 %v798_v24  ;;  %451 = vmatprep.subr.bf16.mxu1 %v819_v30  ;;  %p954_p9 = por %p953_p8, %p952_p7 }
  0x51   :  { %p955_p10 = pnand %p954_p9, %p948_p6 }
  0x52   :  { %205 = vmatpush1.bf16.msra.mxu0 %v800_v25  ;;  %452 = vmatpush1.bf16.msra.mxu1 %v821_v31 }
  0x53   :  { %453 = vmatprep.subr.bf16.mxu1 %v822_v32  ;;  %745 = vmatprep.subr.bf16.mxu0 %v849_v50 }
  0x55   :  { %223 = vmatmul.mubr.bf16.vlgmr.msra.gmra.mxu0 %v81_v28 }
  0x56   :  { %454 = vmatpush1.bf16.msra.mxu1 %v824_v33  ;;  %746 = vmatpush3.bf16.msra.mxu0 %v850_v51  ;;  %v728_v33 = vld [vmem:[%s1055_s6] ss:$0 sm:$0xff] }
  0x57   :  { %455 = vmatprep.subr.bf16.mxu1 %v825_v34  ;;  %747 = vmatprep.subr.bf16.mxu0 %v851_v52 }
  0x5a   :  { %456 = vmatpush2.bf16.msra.mxu1 %v827_v35  ;;  %748 = vmatpush3.bf16.msra.mxu0 %v852_v53 }
  0x5b   :  { %457 = vmatprep.subr.bf16.mxu1 %v828_v36  ;;  %749 = vmatprep.subr.bf16.mxu0 %v853_v54 }
  0x5e   :  { %458 = vmatpush2.bf16.msra.mxu1 %v830_v37  ;;  %750 = vmatpush3.bf16.msra.mxu0 %v854_v55 }
  0x5f   :  { %459 = vmatprep.subr.bf16.mxu1 %v831_v38  ;;  %751 = vmatprep.subr.bf16.mxu0 %v855_v56 }
  0x62   :  { %460 = vmatpush2.bf16.msra.mxu1 %v833_v39  ;;  %752 = vmatpush3.bf16.msra.mxu0 %v856_v57 }
  0x63   :  { %461 = vmatprep.subr.bf16.mxu1 %v834_v40  ;;  %753 = vmatprep.subr.bf16.mxu0 %v857_v58 }
  0x66   :  { %462 = vmatpush2.bf16.msra.mxu1 %v836_v41  ;;  %754 = vmatpush3.bf16.msra.mxu0 %v858_v59 }
  0x67   :  { %463 = vmatprep.subr.bf16.mxu1 %v837_v42  ;;  %755 = vmatprep.subr.bf16.mxu0 %v859_v60 }
  0x6a   :  { %464 = vmatpush2.bf16.msra.mxu1 %v839_v43  ;;  %756 = vmatpush3.bf16.msra.mxu0 %v860_v61 }
  0x6b   :  { %465 = vmatprep.subr.bf16.mxu1 %v840_v44  ;;  %757 = vmatprep.subr.bf16.mxu0 %v861_v15 }
  0x6e   :  { %466 = vmatpush2.bf16.msra.mxu1 %v842_v45  ;;  %758 = vmatpush3.bf16.msra.mxu0 %v862_v16 }
  0x6f   :  { %467 = vmatprep.subr.bf16.mxu1 %v843_v46  ;;  %759 = vmatprep.subr.bf16.mxu0 %v863_v17 }
  0x72   :  { %468 = vmatpush2.bf16.msra.mxu1 %v845_v47  ;;  %760 = vmatpush3.bf16.msra.mxu0 %v864_v18 }
  0x73   :  { %469 = vmatprep.subr.bf16.mxu1 %v846_v48 }
  0x76   :  { %470 = vmatpush2.bf16.msra.mxu1 %v848_v49 }
 0x115   :  { %v224_v5 = vpop.f32.mrf.mxu0 }
 0x116   :  { %v225_v6 = vadd.f32 %v224_v5, %v103_v3 }
 0x117   :  { %v226_v7 = vpop.f32.mrf.mxu0 }
 0x118   :  { %v227_v8 = vadd.f32 %v226_v7, %v107_v4  ;;  %v231_v9 = vmax.f32 %v225_v6, 0.0 }
 0x119   :  { %v228_v10 = vpop.f32.mrf.mxu0 }
 0x11a   :  { %v232_v11 = vmax.f32 %v227_v8, 0.0  ;;  %v233_v14 = vpack.c.bf16 %v231_v9, %v231_v9 }
 0x11b   :  { %v229_v12 = vpop.f32.mrf.mxu0 }
 0x11c   :  { %v234_v13 = vpack.c.bf16 %v232_v11, %v232_v11 }
 0x11e   :  { %471 = vmatprep.mubr.bf16.mxu1 %v234_v13 }
 0x11f   :  { %472 = vmatmul.mubr.bf16.vlgmr.msra.gmra.mxu1 %v233_v14 }
 0x1df   :  { %v473_v22 = vpop.f32.mrf.mxu1 }
 0x1e0   :  { %v474_v23 = vadd.f32 %v473_v22, %v272_v20 }
 0x1e1   :  { %v475_v24 = vpop.f32.mrf.mxu1 }
 0x1e2   :  { %v476_v25 = vadd.f32 %v475_v24, %v276_v21  ;;  %v480_v26 = vmax.f32 %v474_v23, 0.0 }
 0x1e3   :  { %v477_v27 = vpop.f32.mrf.mxu1 }
 0x1e4   :  { %v481_v28 = vmax.f32 %v476_v25, 0.0  ;;  %v482_v31 = vpack.c.bf16 %v480_v26, %v480_v26 }
 0x1e5   :  { %v478_v29 = vpop.f32.mrf.mxu1 }
 0x1e6   :  { %v483_v30 = vpack.c.bf16 %v481_v28, %v481_v28 }
 0x1e8   :  { %651 = vmatprep.mubr.bf16.mxu0 %v483_v30 }
 0x1e9   :  { %652 = vmatmul.mubr.bf16.vlgmr.msra.gmra.mxu0 %v482_v31 }
 0x2a9   :  { %v761_v32 = vpop.f32.mrf.mxu0 }
 0x2ab   :  { %v762_v34 = vpop.f32.mrf.mxu0 }
 0x2ac   :  { %v763_v35 = vadd.f32 %v762_v34, %v761_v32 }
 0x2ad   :  { %v764_v36 = vpop.f32.mrf.mxu0 }
 0x2ae   :  { %v654_v37 = vadd.f32 %v763_v35, %v728_v33 }
 0x2af   :  { %v765_v38 = vpop.f32.mrf.mxu0 }
 0x2b0   :  { %865 = vtanh.f32 %v654_v37 }
 0x2bd   :  { %v866_v39 = vpop.eup %865 }
 0x2be   :  { %v660_v40 = vadd.f32 1.0, %v866_v39 }
 0x2c0   :  { %v661_v41 = vmul.f32 0.5, %v660_v40 }
 0x2c2   :  { %662 = vst [vmem:[#allocation10] sm:$0xff] %v661_v41 }
 0x2c3   :  { %958 = shalt.err (!%p955_p10)
}
 0x2c4   :  { %672 = dma.vmem_to_hbm [thread:$0]  %s670_s26, 128, %s1056_s7, [#allocation4]  }
 0x2c5   :  { %973 = dma.done.wait [#allocation4], 128  }
 0x2c6   :  { %974 = vsyncadd [#allocation4], 4294967168 }
 0x2c7   :  { %676 = vsyncpa [#allocation3], 1 }
 0x2c8   :  { %677 = vsyncpa [#allocation6], 1 }
 0x2c9   :  { %678 = vsyncpa [#allocation9], 1 }
 0x2ca   :  { %679 = vsyncpa [#allocation4], 1 }

</bundles_post_ra>
